<compile_context>
chip_gen: v7x
topology: tpu7x:2x2x1
jax: 0.10.0
libtpu: 0.0.40
codegen_flags: <defaults>
</compile_context>

<pallas_src>
import jax
import jax.numpy as jnp
import numpy as np
from jax.experimental import pallas as pl
from jax.experimental.pallas import tpu as pltpu


def _round_up(x, m):
    return (x + m - 1) // m * m


def _pick_tile(hw_pad, tm_max):
    """Largest multiple of 128 that divides hw_pad (hw_pad % 128 == 0) and is <= tm_max."""
    n128 = hw_pad // 128
    k_max = min(tm_max // 128, n128)
    for k in range(k_max, 0, -1):
        if n128 % k == 0:
            return 128 * k
    return 128


def _conv_matmul_kernel(x_ref, w_ref, b_ref, o_ref):
    """One (image, pixel-tile) step of the im2col conv, lanes = pixels.

    x_ref: [1, K_pad, TM]  bf16 im2col patches (27 real tap*channel rows, zero-padded to 32)
    w_ref: [Cout, K_pad]   bf16 flattened conv weights (resident across the whole grid)
    b_ref: [Cout, 1]       f32 bias (resident)
    o_ref: [1, Cout, TM]   f32 conv output tile (post-ReLU), channel-major
    """
    y = jnp.dot(w_ref[...], x_ref[0], preferred_element_type=jnp.float32)
    o_ref[0] = jnp.maximum(y + b_ref[...], 0.0)


@jax.jit
def truncated_vgg19_forward(x_nchw, weight_oihw, bias):
    """x_nchw: [N, 3, H, W] f32 -> [N, 64, H, W] f32 (conv3x3, pad=1, stride=1, + ReLU)."""
    N, Cin, H, W = x_nchw.shape
    Cout, _, KH, KW = weight_oihw.shape
    assert (KH, KW) == (3, 3), "truncated VGG19 first layer uses 3x3 kernels"

    K = KH * KW * Cin                 # 27 for the VGG first conv
    K_pad = _round_up(K, 8)           # 32: aligned contraction axis

    HW = H * W
    HW_pad = _round_up(HW, 128)
    TM = _pick_tile(HW_pad, 8192)     # multiple of 128, divides HW_pad exactly

    # ---- channel-major im2col in bf16 (one concatenate, K padding merged in).
    x_bf = x_nchw.astype(jnp.bfloat16)
    x_p = jnp.pad(x_bf, ((0, 0), (0, 0), (1, 1), (1, 1)))
    slabs = [x_p[:, :, ky:ky + H, kx:kx + W] for ky in range(KH) for kx in range(KW)]
    slabs.append(jnp.zeros((N, K_pad - K, H, W), jnp.bfloat16))
    patches = jnp.concatenate(slabs, axis=1)            # (N, K_pad, H, W); k = (ky*3+kx)*3+c
    patches = patches.reshape(N, K_pad, HW)
    if HW_pad != HW:
        patches = jnp.pad(patches, ((0, 0), (0, 0), (0, HW_pad - HW)))

    # PyTorch weight [Cout, Cin, 3, 3] -> [Cout, 3, 3, Cin] -> [Cout, 27] -> pad K to 32.
    # Column index ky*9 + kx*3 + c matches the patch row layout built above.
    w = jnp.transpose(weight_oihw, (0, 2, 3, 1)).reshape(Cout, K)
    w = jnp.pad(w, ((0, 0), (0, K_pad - K))).astype(jnp.bfloat16)
    b = bias.reshape(Cout, 1).astype(jnp.float32)

    grid = (N, HW_pad // TM)
    out = pl.pallas_call(
        _conv_matmul_kernel,
        out_shape=jax.ShapeDtypeStruct((N, Cout, HW_pad), jnp.float32),
        grid=grid,
        in_specs=[
            pl.BlockSpec((1, K_pad, TM), lambda n, t: (n, 0, t)),
            pl.BlockSpec((Cout, K_pad), lambda n, t: (0, 0)),   # weights stay resident
            pl.BlockSpec((Cout, 1), lambda n, t: (0, 0)),       # bias stays resident
        ],
        out_specs=pl.BlockSpec((1, Cout, TM), lambda n, t: (n, 0, t)),
        compiler_params=pltpu.CompilerParams(
            dimension_semantics=("parallel", "parallel"),
        ),
    )(patches, w, b)

    if HW_pad != HW:
        out = out[:, :, :HW]
    return out.reshape(N, Cout, H, W)      # channel-major already -> free reshape to NCHW


def _reference(x_nchw, weight_oihw, bias):
    """Pure-JAX reference: lax conv (NCHW) + bias + ReLU at highest precision."""
    out = jax.lax.conv_general_dilated(
        x_nchw, weight_oihw,
        window_strides=(1, 1), padding=((1, 1), (1, 1)),
        dimension_numbers=("NCHW", "OIHW", "NCHW"),
        precision=jax.lax.Precision.HIGHEST,
    )
    return jnp.maximum(out + bias[None, :, None, None], 0.0)


if __name__ == "__main__":
    key = jax.random.PRNGKey(0)
    k_x, k_w, k_b = jax.random.split(key, 3)

    N, Cin, H, W = 2, 3, 16, 16      # VGG19 takes 3-channel images
    Cout = 64                        # first VGG19 conv: 3 -> 64

    x = jax.random.normal(k_x, (N, Cin, H, W), dtype=jnp.float32)
    # TODO(synk): torchvision pretrained VGG19 weights cannot be loaded in-script;
    # deterministic synthetic parameters with identical shapes are used instead.
    weight = jax.random.normal(k_w, (Cout, Cin, 3, 3), dtype=jnp.float32) * 0.1
    bias = jax.random.normal(k_b, (Cout,), dtype=jnp.float32) * 0.1

    out = jax.block_until_ready(truncated_vgg19_forward(x, weight, bias))
    ref = jax.block_until_ready(_reference(x, weight, bias))

    assert out.shape == (N, Cout, H, W), out.shape
    # bf16 operands with f32 accumulation (MXU-equivalent precision) vs HIGHEST reference.
    err = np.max(np.abs(np.asarray(out) - np.asarray(ref)))
    assert np.allclose(np.asarray(out), np.asarray(ref), rtol=2e-2, atol=2e-2), err

    print("KERNEL_OK")
</pallas_src>

<mosaic_0001>
module attributes {stable_mosaic.version = 11 : i64} {
  func.func @_conv_matmul_kernel(%arg0: i32, %arg1: i32, %arg2: memref<1x32x256xbf16, #tpu.memory_space<vmem>>, %arg3: memref<64x32xbf16, #tpu.memory_space<vmem>>, %arg4: memref<64x1xf32, #tpu.memory_space<vmem>>, %arg5: memref<1x64x256xf32, #tpu.memory_space<vmem>>) attributes {dimension_semantics = [#tpu.dimension_semantics<parallel>, #tpu.dimension_semantics<parallel>], iteration_bounds = array<i64: 2, 1>, scalar_prefetch = 0 : i64, scratch_operands = 0 : i64, tpu.core_type = #tpu.core_type<tc>, window_params = [{transform_indices = @transform_0, window_bounds = array<i64: 1, 32, 256>}, {pipeline_mode = #tpu.pipeline_mode<synchronous>, transform_indices = @transform_1, window_bounds = array<i64: 64, 32>}, {pipeline_mode = #tpu.pipeline_mode<synchronous>, transform_indices = @transform_2, window_bounds = array<i64: 64, 1>}, {transform_indices = @transform_3, window_bounds = array<i64: 1, 64, 256>}]} {
    %c0 = arith.constant 0 : index
    %c0_0 = arith.constant 0 : index
    %0 = vector.load %arg3[%c0, %c0_0] : memref<64x32xbf16, #tpu.memory_space<vmem>>, vector<64x32xbf16>
    %c0_1 = arith.constant 0 : index
    %c0_2 = arith.constant 0 : index
    %c0_3 = arith.constant 0 : index
    %1 = vector.load %arg2[%c0_1, %c0_2, %c0_3] : memref<1x32x256xbf16, #tpu.memory_space<vmem>>, vector<1x32x256xbf16>
    %2 = vector.shape_cast %1 : vector<1x32x256xbf16> to vector<32x256xbf16>
    %cst = arith.constant dense<0.000000e+00> : vector<64x256xf32>
    %3 = tpu.matmul %0, %2, %cst {dimension_numbers = #tpu.dot_dimension_numbers<[1], [0], [0], [1], [0, 0, 1, 1], [], []>} : vector<64x32xbf16>, vector<32x256xbf16>, vector<64x256xf32> -> vector<64x256xf32>
    %c0_4 = arith.constant 0 : index
    %c0_5 = arith.constant 0 : index
    %4 = vector.load %arg4[%c0_4, %c0_5] : memref<64x1xf32, #tpu.memory_space<vmem>>, vector<64x1xf32>
    %5 = vector.broadcast %4 : vector<64x1xf32> to vector<64x256xf32>
    %6 = arith.addf %3, %5 : vector<64x256xf32>
    %cst_6 = arith.constant 0.000000e+00 : f32
    %7 = vector.broadcast %cst_6 : f32 to vector<64x256xf32>
    %8 = arith.maximumf %6, %7 : vector<64x256xf32>
    %c0_7 = arith.constant 0 : index
    %c0_8 = arith.constant 0 : index
    %c0_9 = arith.constant 0 : index
    %9 = vector.load %arg5[%c0_7, %c0_8, %c0_9] : memref<1x64x256xf32, #tpu.memory_space<vmem>>, vector<1x64x256xf32>
    %10 = vector.shape_cast %9 : vector<1x64x256xf32> to vector<64x256xf32>
    %11 = vector.shape_cast %8 : vector<64x256xf32> to vector<1x64x256xf32>
    tpu.vector_store %arg5[%c0_7, %c0_8, %c0_9], %11 {strides = array<i32>} : memref<1x64x256xf32, #tpu.memory_space<vmem>>, vector<1x64x256xf32>,
    return
  }
  func.func @transform_0(%arg0: i32, %arg1: i32) -> (i32, i32, i32) {
    %c0_i32 = arith.constant 0 : i32
    %c0_i32_0 = arith.constant 0 : i32
    return %arg0, %c0_i32, %arg1 : i32, i32, i32
  }
  func.func @transform_1(%arg0: i32, %arg1: i32) -> (i32, i32) {
    %c0_i32 = arith.constant 0 : i32
    %c0_i32_0 = arith.constant 0 : i32
    %c0_i32_1 = arith.constant 0 : i32
    return %c0_i32, %c0_i32_0 : i32, i32
  }
  func.func @transform_2(%arg0: i32, %arg1: i32) -> (i32, i32) {
    %c0_i32 = arith.constant 0 : i32
    %c0_i32_0 = arith.constant 0 : i32
    %c0_i32_1 = arith.constant 0 : i32
    return %c0_i32, %c0_i32_0 : i32, i32
  }
  func.func @transform_3(%arg0: i32, %arg1: i32) -> (i32, i32, i32) {
    %c0_i32 = arith.constant 0 : i32
    %c0_i32_0 = arith.constant 0 : i32
    return %arg0, %c0_i32, %arg1 : i32, i32, i32
  }
}

</mosaic_0001>

<bundles_post_ra>
// kernel: truncated_vgg19_forward.1
= control target key start
LH: loop header
LB: loop body
LE: loop exit
PB: predicated region body
PF: predicated region fallthrough
CT: control target
= control target key end

     0   :  { %s627_s12 = smov 0   ;;  %s629_s13 = smov 0   ;;  %s718_s0 = inlined_call_operand.vmem [shape: bf16[2,32,256], index: 0, kind: input, shape index: {}]   ;;  %s719_s1 = inlined_call_operand.vmem [shape: bf16[64,32], index: 1, kind: input, shape index: {}]   ;;  %s720_s2 = inlined_call_operand.vmem [shape: f32[64,1], index: 2, kind: input, shape index: {}]   ;;  %s721_s3 = inlined_call_operand.vmem [shape: f32[2,64,256], index: 3, kind: output, shape index: {}]  }
   0x1   :  { %s631_s14 = smov 0  }
   0x2 LB: > { %s25_s15 = sadd.s32 1, %s600_s13  ;;  %p520_p0 = scmp.ge.s32.totalorder %s604_s14, 1  ;;  %s604_s14 = sphi %s631_s14, %s13_s14   ;;  %s600_s13 = sphi %s629_s13, %s723_s13   ;;  %s596_s12 = sphi %s627_s12, %s722_s12  }
   0x3   : > { %p27_p1 = scmp.ge.s32.totalorder %s25_s15, 2  ;;  %p158_p2 = scmp.lt.s32.totalorder %s604_s14, 3 }
   0x5   : > { %s725_s15 = smov (%p27_p1, %s25_s15), 0  ;;  %p159_p3 = pnand %p520_p0, %p158_p2 }
   0x6   : > { %p191_p4 = scmp.lt.s32.totalorder (!%p159_p3), %s596_s12, 1  ;;  %v606_v0 = vmov (!%p159_p3), 0   ;;  %v225_v1 = vld [vmem:[%s720_s2 + $0x10] sm:$0xff] (!%p159_p3)  ;;  %v223_v2 = vld [vmem:[%s720_s2] sm:$0xff] (!%p159_p3)  ;;  %v226_v6 = vld [vmem:[%s720_s2 + $0x18] sm:$0xff] (!%p159_p3)  ;;  %vm311_vm0 = vcmask (!%p159_p3), 261120  }
   0x7   : > { %162 = sbr.rel (%p159_p3) target bundleno = 254 (0xfe), region = 32  ;;  %356 = vmatprep.mubr.bf16.mxu0 (!%p159_p3), %v606_v0  ;;  %376 = vmatprep.mubr.bf16.mxu1 (!%p159_p3), %v606_v0  ;;  %v224_v7 = vld [vmem:[%s720_s2 + $0x8] sm:$0xff] (!%p159_p3)  ;;  %v578_v9 = vld [vmem:[%s719_s1] sm:$0xff] (!%p159_p3)   ;;  %v579_v10 = vld [vmem:[%s719_s1 + $0x10] sm:$0xff] (!%p159_p3)  }
   0x8   : > { %571 = vset.pattern.permute.xlu1 (!%p159_p3), %v606_v0  ;;  %570 = vset.pattern.permute.xlu0 (!%p159_p3), %v606_v0  ;;  %v228_v11 = vld [vmem:[%s720_s2 + $0x28] sm:$0xff] (!%p159_p3)  ;;  %v227_v12 = vld [vmem:[%s720_s2 + $0x20] sm:$0xff] (!%p159_p3)  ;;  %v230_v13 = vld [vmem:[%s720_s2 + $0x38] sm:$0xff] (!%p159_p3) }
   0x9   : > { %243 = vperm.xlu1 (!%p159_p3), %571, %v225_v1   ;;  %233 = vperm.xlu0 (!%p159_p3), %570, %v223_v2   ;;  %v229_v14 = vld [vmem:[%s720_s2 + $0x30] sm:$0xff] (!%p159_p3)  ;;  %v580_v15 = vld [vmem:[%s719_s1 + $0x8] sm:$0xff] (!%p159_p3)   ;;  %v581_v16 = vld [vmem:[%s719_s1 + $0x18] sm:$0xff] (!%p159_p3)  }
   0xd   : > { %248 = vperm.xlu1 (!%p159_p3), %571, %v226_v6   ;;  %238 = vperm.xlu0 (!%p159_p3), %570, %v224_v7  }
   0xe   : > { %s727_s12 = smov (!%p191_p4, %s596_s12), 1 }
   0xf   : > { %s539_s16 = sshll.u32 %s727_s12, 5  ;;  %s540_s21 = sshll.u32 %s727_s12, 7 }
  0x10   : > { %s198_s23 = scalar_lea.vmem %s718_s0, %s539_s16  ;;  %s691_s24 = scalar_lea.vmem %s721_s3, %s540_s21 }
  0x11   : > { %v572_v3 = vld [vmem:[%s198_s23 + $0x4] ss:$8 sps:$4 sm:$0xff]   ;;  %v574_v4 = vld [vmem:[%s198_s23] ss:$8 sps:$4 sm:$0xff]   ;;  %v575_v5 = vld [vmem:[%s198_s23 + $0x14] ss:$8 sps:$4 sm:$0xff]   ;;  %258 = vperm.xlu1 %571, %v228_v11   ;;  %253 = vperm.xlu0 %570, %v227_v12  }
  0x12   : > { %324 = vmatprep.subr.bf16.mxu0 %v572_v3  ;;  %541 = vmatprep.subr.bf16.mxu1 %v572_v3  ;;  %v577_v8 = vld [vmem:[%s198_s23 + $0x10] ss:$8 sps:$4 sm:$0xff]  }
  0x13   : > { %325 = vmatpush1.bf16.msra.mxu0 %v574_v4  ;;  %543 = vmatpush1.bf16.msra.mxu1 %v574_v4 }
  0x14   : > { %326 = vmatprep.subr.bf16.mxu0 %v575_v5  ;;  %542 = vmatprep.subr.bf16.mxu1 %v575_v5 }
  0x15   : > { %268 = vperm.xlu1 %571, %v230_v13   ;;  %263 = vperm.xlu0 %570, %v229_v14  }
  0x17   : > { %327 = vmatpush1.bf16.msra.mxu0 %v577_v8  ;;  %544 = vmatpush1.bf16.msra.mxu1 %v577_v8 }
  0x1a   : > { %533 = vmatmul.mubr.msk.bf16.vlgmr.msra.gmra.mrb[0].mxu0 %vm311_vm0, %v578_v9  ;;  %535 = vmatmul.mubr.msk.bf16.vlgmr.msra.gmra.mrb[0].mxu1 %vm311_vm0, %v579_v10 }
  0x1b   : > { %366 = vmatprep.mubr.bf16.mxu0 %v606_v0  ;;  %386 = vmatprep.mubr.bf16.mxu1 %v606_v0 }
  0x22   : > { %534 = vmatmul.mubr.msk.bf16.gmra.mrb[4].mxu0 %vm311_vm0, %v580_v15  ;;  %536 = vmatmul.mubr.msk.bf16.gmra.mrb[4].mxu1 %vm311_vm0, %v581_v16 }
  0x88   : > { %v244_v17 = vpop.permute.xlu1 %243  ;;  %v234_v18 = vpop.permute.xlu0 %233 }
  0x8c   : > { %v249_v19 = vpop.permute.xlu1 %248  ;;  %v239_v20 = vpop.permute.xlu0 %238 }
  0x90   : > { %v259_v21 = vpop.permute.xlu1 %258  ;;  %v254_v22 = vpop.permute.xlu0 %253 }
  0x94   : > { %v269_v47 = vpop.permute.xlu1 %268  ;;  %v264_v48 = vpop.permute.xlu0 %263 }
  0xed   : > { %v358_v23 = vpop.f32.mrb[0].mxu0  ;;  %v378_v24 = vpop.f32.mrb[0].mxu1 }
  0xee   : > { %v359_v25 = vadd.f32 %v358_v23, %v234_v18  ;;  %v379_v26 = vadd.f32 %v378_v24, %v254_v22  ;;  %v360_v27 = vpop.f32.mrb[1].mxu0  ;;  %v380_v28 = vpop.f32.mrb[1].mxu1 }
  0xef   : > { %v361_v29 = vadd.f32 %v360_v27, %v234_v18  ;;  %v381_v30 = vadd.f32 %v380_v28, %v254_v22  ;;  %v362_v31 = vpop.f32.mrb[2].mxu0  ;;  %v382_v32 = vpop.f32.mrb[2].mxu1 }
  0xf0   : > { %v397_v33 = vmax.f32 %v359_v25, 0.0  ;;  %v405_v34 = vmax.f32 %v379_v26, 0.0  ;;  %v363_v35 = vadd.f32 %v362_v31, %v239_v20  ;;  %v383_v36 = vadd.f32 %v382_v32, %v259_v21  ;;  %v364_v37 = vpop.f32.mrb[3].mxu0  ;;  %v384_v38 = vpop.f32.mrb[3].mxu1 }
  0xf1   : > { %v398_v39 = vmax.f32 %v361_v29, 0.0  ;;  %v406_v40 = vmax.f32 %v381_v30, 0.0  ;;  %v365_v41 = vadd.f32 %v364_v37, %v239_v20  ;;  %v385_v42 = vadd.f32 %v384_v38, %v259_v21 }
  0xf2   : > { %413 = vst [vmem:[%s691_s24] sm:$0xff] %v397_v33  ;;  %421 = vst [vmem:[%s691_s24 + $0x40] sm:$0xff] %v405_v34  ;;  %v399_v43 = vmax.f32 %v363_v35, 0.0  ;;  %v407_v44 = vmax.f32 %v383_v36, 0.0 }
  0xf3   : > { %414 = vst [vmem:[%s691_s24 + $0x8] sm:$0xff] %v398_v39  ;;  %422 = vst [vmem:[%s691_s24 + $0x48] sm:$0xff] %v406_v40  ;;  %v400_v45 = vmax.f32 %v365_v41, 0.0  ;;  %v408_v46 = vmax.f32 %v385_v42, 0.0 }
  0xf4   : > { %415 = vst [vmem:[%s691_s24 + $0x10] sm:$0xff] %v399_v43  ;;  %423 = vst [vmem:[%s691_s24 + $0x50] sm:$0xff] %v407_v44 }
  0xf5   : > { %416 = vst [vmem:[%s691_s24 + $0x18] sm:$0xff] %v400_v45  ;;  %424 = vst [vmem:[%s691_s24 + $0x58] sm:$0xff] %v408_v46  ;;  %v368_v49 = vpop.f32.mrb[4].mxu0  ;;  %v388_v50 = vpop.f32.mrb[4].mxu1 }
  0xf6   : > { %v369_v51 = vadd.f32 %v368_v49, %v244_v17  ;;  %v389_v52 = vadd.f32 %v388_v50, %v264_v48  ;;  %v370_v53 = vpop.f32.mrb[5].mxu0  ;;  %v390_v54 = vpop.f32.mrb[5].mxu1 }
  0xf7   : > { %v371_v55 = vadd.f32 %v370_v53, %v244_v17  ;;  %v391_v56 = vadd.f32 %v390_v54, %v264_v48  ;;  %v372_v57 = vpop.f32.mrb[6].mxu0  ;;  %v392_v58 = vpop.f32.mrb[6].mxu1 }
  0xf8   : > { %v401_v59 = vmax.f32 %v369_v51, 0.0  ;;  %v409_v60 = vmax.f32 %v389_v52, 0.0  ;;  %v373_v61 = vadd.f32 %v372_v57, %v249_v19  ;;  %v393_v62 = vadd.f32 %v392_v58, %v269_v47  ;;  %v374_v63 = vpop.f32.mrb[7].mxu0  ;;  %v394_v0 = vpop.f32.mrb[7].mxu1 }
  0xf9   : > { %v402_v1 = vmax.f32 %v371_v55, 0.0  ;;  %v410_v2 = vmax.f32 %v391_v56, 0.0  ;;  %v375_v3 = vadd.f32 %v374_v63, %v249_v19  ;;  %v395_v4 = vadd.f32 %v394_v0, %v269_v47 }
  0xfa   : > { %417 = vst [vmem:[%s691_s24 + $0x20] sm:$0xff] %v401_v59  ;;  %425 = vst [vmem:[%s691_s24 + $0x60] sm:$0xff] %v409_v60  ;;  %v403_v5 = vmax.f32 %v373_v61, 0.0  ;;  %v411_v6 = vmax.f32 %v393_v62, 0.0 }
  0xfb   : > { %418 = vst [vmem:[%s691_s24 + $0x28] sm:$0xff] %v402_v1  ;;  %426 = vst [vmem:[%s691_s24 + $0x68] sm:$0xff] %v410_v2  ;;  %v404_v7 = vmax.f32 %v375_v3, 0.0  ;;  %v412_v8 = vmax.f32 %v395_v4, 0.0 }
  0xfc   : > { %419 = vst [vmem:[%s691_s24 + $0x30] sm:$0xff] %v403_v5  ;;  %427 = vst [vmem:[%s691_s24 + $0x70] sm:$0xff] %v411_v6 }
  0xfd   : > { %420 = vst [vmem:[%s691_s24 + $0x38] sm:$0xff] %v404_v7  ;;  %428 = vst [vmem:[%s691_s24 + $0x78] sm:$0xff] %v412_v8 }
  0xfe PF: > { %s13_s14 = sadd.s32 1, %s604_s14   ;;  %s722_s12 = smov %s600_s13 }
  0xff   : > { %p10_p5 = scmp.ge.s32.totalorder %s13_s14, 4   ;;  %s723_s13 = smov %s725_s15 }
 0x101   :  { %12 = sbr.rel (!%p10_p5) target bundleno = 2 (0x2), region = 62 }

</bundles_post_ra>
